<compile_context>
chip_gen: v6e
topology: v6e:2x2x1
jax: 0.10.0
libtpu: 0.0.40
codegen_flags: <defaults>
</compile_context>

<pallas_src>
import functools

import jax
import jax.numpy as jnp
from jax import lax
from jax.experimental import pallas as pl
from jax.experimental.pallas import tpu as pltpu


def _round_up(x, m):
    return ((x + m - 1) // m) * m


def _linear_kernel(x_ref, w_ref, b_ref, o_ref, acc_ref):
    """Compute one (tm, tn) output tile, accumulating over the K grid axis.

    x_ref:   (tm, tk)       activation row-tile
    w_ref:   (tn, tk)       weight tile, PyTorch (N, K) layout (no transpose in HBM)
    b_ref:   (1, tn) f32    bias tile (pre-cast in wrapper)
    o_ref:   (tm, tn)       output tile (lane-dense: tn is a multiple of 128)
    acc_ref: (tm, tn) f32   VMEM accumulator, resident across the K axis
    """
    k = pl.program_id(2)

    @pl.when(k == 0)
    def _():
        acc_ref[...] = jnp.zeros_like(acc_ref)

    # x @ W.T on the MXU: contract the last dim of both operands.
    acc_ref[...] += lax.dot_general(
        x_ref[...], w_ref[...],
        dimension_numbers=(((1,), (1,)), ((), ())),
        preferred_element_type=jnp.float32,
    )

    @pl.when(k == pl.num_programs(2) - 1)
    def _():
        o_ref[...] = (acc_ref[...] + b_ref[...]).astype(o_ref.dtype)


def _pick_k_tile(K, tk_max):
    """Largest 128-multiple tile <= tk_max that divides K; else a single full-K block."""
    if K <= max(tk_max, 128):
        return K
    cand = (tk_max // 128) * 128
    while cand >= 128:
        if K % cand == 0:
            return cand
        cand -= 128
    return K


@functools.partial(jax.jit, static_argnames=("tm", "tn", "tk"))
def linear_overtime(x, weight, bias, *, tm=256, tn=256, tk=512):
    """y = x.reshape(-1, K) @ weight.T + bias, reshaped back to (T, B, N).

    x:      (T, B, K)
    weight: (N, K)   -- PyTorch nn.Linear layout, used as-is (no .T materialized)
    bias:   (N,)
    """
    T, B, K = x.shape
    N, K2 = weight.shape
    assert K2 == K
    M = T * B
    out_dtype = x.dtype

    # ---- tile selection: big M tiles, lane-dense N tiles, K tiled when large ----
    tm_eff = min(tm, _round_up(M, 8))          # multiple of 8 sublanes
    M_pad = _round_up(M, tm_eff)               # pad rows explicitly (no ragged tiles)
    N_pad = _round_up(N, 128)                  # lane-dense output stores
    tn_eff = min(_round_up(tn, 128), N_pad)
    while N_pad % tn_eff:                      # tn must divide padded N
        tn_eff -= 128
    tk_eff = _pick_k_tile(K, tk)

    # ---- wrapper-side layout: pad only when ragged; bias pre-cast to f32 ----
    x2d = x.reshape(M, K)
    if M_pad != M:
        x2d = jnp.pad(x2d, ((0, M_pad - M), (0, 0)))
    w = weight
    b = bias.astype(jnp.float32)
    if N_pad != N:
        w = jnp.pad(w, ((0, N_pad - N), (0, 0)))
        b = jnp.pad(b, ((0, N_pad - N),))
    b2d = b.reshape(1, N_pad)

    grid = (M_pad // tm_eff, N_pad // tn_eff, K // tk_eff)

    itemsize = jnp.dtype(out_dtype).itemsize
    cost = pl.CostEstimate(
        flops=2 * M_pad * K * N_pad,
        transcendentals=0,
        bytes_accessed=(M_pad * K + N_pad * K + M_pad * N_pad) * itemsize
        + N_pad * 4,
    )

    y2d = pl.pallas_call(
        _linear_kernel,
        out_shape=jax.ShapeDtypeStruct((M_pad, N_pad), out_dtype),
        grid_spec=pltpu.PrefetchScalarGridSpec(
            num_scalar_prefetch=0,
            grid=grid,
            in_specs=[
                pl.BlockSpec((tm_eff, tk_eff), lambda i, j, k: (i, k)),   # x rows
                pl.BlockSpec((tn_eff, tk_eff), lambda i, j, k: (j, k)),   # W (N,K) tile
                pl.BlockSpec((1, tn_eff), lambda i, j, k: (0, j)),        # bias tile
            ],
            out_specs=pl.BlockSpec((tm_eff, tn_eff), lambda i, j, k: (i, j)),
            scratch_shapes=[pltpu.VMEM((tm_eff, tn_eff), jnp.float32)],
        ),
        compiler_params=pltpu.CompilerParams(
            dimension_semantics=("parallel", "parallel", "arbitrary"),
            vmem_limit_bytes=32 * 1024 * 1024,   # safe on v5e/v6e/v7x; tiles << budget
        ),
        cost_estimate=cost,
    )(x2d, w, b2d)

    return y2d[:M, :N].reshape(T, B, N)


if __name__ == "__main__":
    # Small config consistent with the PyTorch forward: x is (T, B, input_size).
    T, B = 8, 2
    input_size = 16
    hidden_size = 32

    key = jax.random.PRNGKey(0)
    kx, kw, kb = jax.random.split(key, 3)

    # nn.Linear-style uniform(-1/sqrt(K), 1/sqrt(K)) init.
    bound = 1.0 / (input_size ** 0.5)
    weight = jax.random.uniform(kw, (hidden_size, input_size), jnp.float32,
                                minval=-bound, maxval=bound)
    bias = jax.random.uniform(kb, (hidden_size,), jnp.float32,
                              minval=-bound, maxval=bound)
    x = jax.random.normal(kx, (T, B, input_size), jnp.float32)

    y = jax.block_until_ready(linear_overtime(x, weight, bias))

    # Pure-JAX reference (same math as the PyTorch module).
    y_ref = (x.reshape(-1, input_size) @ weight.T + bias).reshape(T, B, hidden_size)
    assert y.shape == (T, B, hidden_size)
    assert jnp.allclose(y, y_ref, atol=1e-5, rtol=1e-5)

    print("KERNEL_OK")
</pallas_src>

<mosaic_0001>
module attributes {stable_mosaic.version = 11 : i64} {
  func.func @_linear_kernel(%arg0: i32, %arg1: i32, %arg2: i32, %arg3: memref<16x16xf32, #tpu.memory_space<vmem>>, %arg4: memref<128x16xf32, #tpu.memory_space<vmem>>, %arg5: memref<1x128xf32, #tpu.memory_space<vmem>>, %arg6: memref<16x128xf32, #tpu.memory_space<vmem>>, %arg7: memref<16x128xf32, #tpu.memory_space<vmem>>) attributes {dimension_semantics = [#tpu.dimension_semantics<parallel>, #tpu.dimension_semantics<parallel>, #tpu.dimension_semantics<arbitrary>], iteration_bounds = array<i64: 1, 1, 1>, scalar_prefetch = 0 : i64, scratch_operands = 1 : i64, tpu.core_type = #tpu.core_type<tc>, window_params = [{transform_indices = @transform_0, window_bounds = array<i64: 16, 16>}, {transform_indices = @transform_1, window_bounds = array<i64: 128, 16>}, {transform_indices = @transform_2, window_bounds = array<i64: 1, 128>}, {transform_indices = @transform_3, window_bounds = array<i64: 16, 128>}]} {
    %c0_i32 = arith.constant 0 : i32
    %0 = arith.cmpi eq, %arg2, %c0_i32 : i32
    %1 = arith.extui %0 : i1 to i32
    %c0_i32_0 = arith.constant 0 : i32
    %2 = arith.cmpi ne, %1, %c0_i32_0 : i32
    scf.if %2 {
      %cst_10 = arith.constant 0.000000e+00 : f32
      %12 = vector.broadcast %cst_10 : f32 to vector<16x128xf32>
      %c0_11 = arith.constant 0 : index
      %c0_12 = arith.constant 0 : index
      %13 = vector.load %arg7[%c0_11, %c0_12] : memref<16x128xf32, #tpu.memory_space<vmem>>, vector<16x128xf32>
      tpu.vector_store %arg7[%c0_11, %c0_12], %12 {strides = array<i32>} : memref<16x128xf32, #tpu.memory_space<vmem>>, vector<16x128xf32>,
    } else {
    }
    %c0 = arith.constant 0 : index
    %c0_1 = arith.constant 0 : index
    %3 = vector.load %arg7[%c0, %c0_1] : memref<16x128xf32, #tpu.memory_space<vmem>>, vector<16x128xf32>
    %c0_2 = arith.constant 0 : index
    %c0_3 = arith.constant 0 : index
    %4 = vector.load %arg3[%c0_2, %c0_3] : memref<16x16xf32, #tpu.memory_space<vmem>>, vector<16x16xf32>
    %c0_4 = arith.constant 0 : index
    %c0_5 = arith.constant 0 : index
    %5 = vector.load %arg4[%c0_4, %c0_5] : memref<128x16xf32, #tpu.memory_space<vmem>>, vector<128x16xf32>
    %cst = arith.constant dense<0.000000e+00> : vector<16x128xf32>
    %6 = tpu.matmul %4, %5, %cst {dimension_numbers = #tpu.dot_dimension_numbers<[1], [1], [0], [0], [0, 0, 1, 0], [], []>} : vector<16x16xf32>, vector<128x16xf32>, vector<16x128xf32> -> vector<16x128xf32>
    %7 = arith.addf %3, %6 : vector<16x128xf32>
    %c0_6 = arith.constant 0 : index
    %c0_7 = arith.constant 0 : index
    %8 = vector.load %arg7[%c0_6, %c0_7] : memref<16x128xf32, #tpu.memory_space<vmem>>, vector<16x128xf32>
    tpu.vector_store %arg7[%c0_6, %c0_7], %7 {strides = array<i32>} : memref<16x128xf32, #tpu.memory_space<vmem>>, vector<16x128xf32>,
    %c0_i32_8 = arith.constant 0 : i32
    %9 = arith.cmpi eq, %arg2, %c0_i32_8 : i32
    %10 = arith.extui %9 : i1 to i32
    %c0_i32_9 = arith.constant 0 : i32
    %11 = arith.cmpi ne, %10, %c0_i32_9 : i32
    scf.if %11 {
      %c0_10 = arith.constant 0 : index
      %c0_11 = arith.constant 0 : index
      %12 = vector.load %arg7[%c0_10, %c0_11] : memref<16x128xf32, #tpu.memory_space<vmem>>, vector<16x128xf32>
      %c0_12 = arith.constant 0 : index
      %c0_13 = arith.constant 0 : index
      %13 = vector.load %arg5[%c0_12, %c0_13] : memref<1x128xf32, #tpu.memory_space<vmem>>, vector<1x128xf32>
      %14 = vector.broadcast %13 : vector<1x128xf32> to vector<16x128xf32>
      %15 = arith.addf %12, %14 : vector<16x128xf32>
      %c0_14 = arith.constant 0 : index
      %c0_15 = arith.constant 0 : index
      %16 = vector.load %arg6[%c0_14, %c0_15] : memref<16x128xf32, #tpu.memory_space<vmem>>, vector<16x128xf32>
      tpu.vector_store %arg6[%c0_14, %c0_15], %15 {strides = array<i32>} : memref<16x128xf32, #tpu.memory_space<vmem>>, vector<16x128xf32>,
    } else {
    }
    return
  }
  func.func @transform_0(%arg0: i32, %arg1: i32, %arg2: i32) -> (i32, i32) {
    %c0_i32 = arith.constant 0 : i32
    return %arg0, %arg2 : i32, i32
  }
  func.func @transform_1(%arg0: i32, %arg1: i32, %arg2: i32) -> (i32, i32) {
    %c0_i32 = arith.constant 0 : i32
    return %arg1, %arg2 : i32, i32
  }
  func.func @transform_2(%arg0: i32, %arg1: i32, %arg2: i32) -> (i32, i32) {
    %c0_i32 = arith.constant 0 : i32
    %c0_i32_0 = arith.constant 0 : i32
    return %c0_i32, %arg1 : i32, i32
  }
  func.func @transform_3(%arg0: i32, %arg1: i32, %arg2: i32) -> (i32, i32) {
    %c0_i32 = arith.constant 0 : i32
    return %arg0, %arg1 : i32, i32
  }
}

</mosaic_0001>

<bundles_post_ra>
// kernel: linear_overtime.1
= control target key start
LH: loop header
LB: loop body
LE: loop exit
PB: predicated region body
PF: predicated region fallthrough
CT: control target
= control target key end

     0   :  { %vm41_vm0 = vcmask 130048   ;;  %s421_s0 = inlined_call_operand.vmem [shape: f32[16,16], index: 0, kind: input, shape index: {}]   ;;  %s422_s1 = inlined_call_operand.vmem [shape: f32[128,16], index: 1, kind: input, shape index: {}]   ;;  %s423_s2 = inlined_call_operand.vmem [shape: f32[1,128], index: 2, kind: input, shape index: {}]   ;;  %s424_s3 = inlined_call_operand.hbm [shape: f32[16,128], index: 3, kind: output, shape index: {}]  }
   0x1   :  { %v40_v0 = vld [vmem:[%s422_s1 + $0x78] sm:$0xff]  ;;  %v39_v1 = vld [vmem:[%s422_s1 + $0x70] sm:$0xff]  ;;  %v38_v2 = vld [vmem:[%s422_s1 + $0x68] sm:$0xff] }
   0x2   :  { %244 = vmatprep.subr.msk.mxu0 %vm41_vm0, %v40_v0  ;;  %v23_v3 = vld [vmem:[%s421_s0] sm:$0xff] }
   0x3   :  { %245 = vmatpush3.xpose.msk.msra.mxu0 %vm41_vm0, %v40_v0  ;;  %276 = vmatprep.mubr.msk.f32.mxu0 %vm41_vm0, %v23_v3 }
   0x4   :  { %246 = vmatprep.subr.msk.mxu0 %vm41_vm0, %v39_v1 }
   0x7   :  { %247 = vmatpush3.xpose.msk.msra.mxu0 %vm41_vm0, %v39_v1 }
   0x8   :  { %8 = vsyncpa [#allocation4], 0  ;;  %248 = vmatprep.subr.msk.mxu0 %vm41_vm0, %v38_v2  ;;  %v37_v4 = vld [vmem:[%s422_s1 + $0x60] sm:$0xff]  ;;  %v36_v5 = vld [vmem:[%s422_s1 + $0x58] sm:$0xff]  ;;  %s304_s23 = smov [#allocation3]  }
   0x9   :  { %v35_v6 = vld [vmem:[%s422_s1 + $0x50] sm:$0xff]  ;;  %v34_v7 = vld [vmem:[%s422_s1 + $0x48] sm:$0xff]  ;;  %v33_v8 = vld [vmem:[%s422_s1 + $0x40] sm:$0xff]  ;;  %s196_s24 = sshll.u32 %s304_s23, 4  ;;  %s197_s24 = int_to_ptr.vmem [resolvable:$true] %s196_s24 }
   0xa   :  { %v32_v9 = vld [vmem:[%s422_s1 + $0x38] sm:$0xff]  ;;  %v31_v10 = vld [vmem:[%s422_s1 + $0x30] sm:$0xff]  ;;  %v30_v11 = vld [vmem:[%s422_s1 + $0x28] sm:$0xff]  ;;  %p287_p1 = scmp.lt.s32.totalorder %s197_s24, %s197_s24 }
   0xb   :  { %249 = vmatpush3.xpose.msk.msra.mxu0 %vm41_vm0, %v38_v2  ;;  %v29_v12 = vld [vmem:[%s422_s1 + $0x20] sm:$0xff]  ;;  %v28_v13 = vld [vmem:[%s422_s1 + $0x18] sm:$0xff]  ;;  %v27_v14 = vld [vmem:[%s422_s1 + $0x10] sm:$0xff] }
   0xc   :  { %250 = vmatprep.subr.msk.mxu0 %vm41_vm0, %v37_v4  ;;  %v26_v15 = vld [vmem:[%s422_s1 + $0x8] sm:$0xff]  ;;  %v25_v16 = vld [vmem:[%s422_s1] sm:$0xff]  ;;  %s282_s1 = scalar_lea.vmem %s197_s24, 256 }
   0xd   :  { %v24_v17 = vld [vmem:[%s421_s0 + $0x8] sm:$0xff]  ;;  %v225_v18 = vld [vmem:[%s423_s2] ss:$0 sm:$0xff]  ;;  %p283_p0 = scmp.ne.s32.totalorder %s197_s24, %s282_s1  ;;  %p288_p2 = scmp.lt.s32.totalorder %s282_s1, %s282_s1 }
   0xf   :  { %251 = vmatpush3.xpose.msk.msra.mxu0 %vm41_vm0, %v37_v4  ;;  %p289_p3 = por %p288_p2, %p287_p1 }
  0x10   :  { %252 = vmatprep.subr.msk.mxu0 %vm41_vm0, %v36_v5 }
  0x11   :  { %p290_p4 = pnand %p289_p3, %p283_p0 }
  0x13   :  { %253 = vmatpush3.xpose.msk.msra.mxu0 %vm41_vm0, %v36_v5 }
  0x14   :  { %254 = vmatprep.subr.msk.mxu0 %vm41_vm0, %v35_v6 }
  0x17   :  { %255 = vmatpush3.xpose.msk.msra.mxu0 %vm41_vm0, %v35_v6 }
  0x18   :  { %256 = vmatprep.subr.msk.mxu0 %vm41_vm0, %v34_v7 }
  0x1b   :  { %257 = vmatpush3.xpose.msk.msra.mxu0 %vm41_vm0, %v34_v7 }
  0x1c   :  { %258 = vmatprep.subr.msk.mxu0 %vm41_vm0, %v33_v8 }
  0x1f   :  { %259 = vmatpush3.xpose.msk.msra.mxu0 %vm41_vm0, %v33_v8 }
  0x20   :  { %260 = vmatprep.subr.msk.mxu0 %vm41_vm0, %v32_v9 }
  0x23   :  { %261 = vmatpush3.xpose.msk.msra.mxu0 %vm41_vm0, %v32_v9 }
  0x24   :  { %262 = vmatprep.subr.msk.mxu0 %vm41_vm0, %v31_v10 }
  0x27   :  { %263 = vmatpush3.xpose.msk.msra.mxu0 %vm41_vm0, %v31_v10 }
  0x28   :  { %264 = vmatprep.subr.msk.mxu0 %vm41_vm0, %v30_v11 }
  0x2b   :  { %265 = vmatpush3.xpose.msk.msra.mxu0 %vm41_vm0, %v30_v11 }
  0x2c   :  { %266 = vmatprep.subr.msk.mxu0 %vm41_vm0, %v29_v12 }
  0x2f   :  { %267 = vmatpush3.xpose.msk.msra.mxu0 %vm41_vm0, %v29_v12 }
  0x30   :  { %268 = vmatprep.subr.msk.mxu0 %vm41_vm0, %v28_v13 }
  0x33   :  { %269 = vmatpush3.xpose.msk.msra.mxu0 %vm41_vm0, %v28_v13 }
  0x34   :  { %270 = vmatprep.subr.msk.mxu0 %vm41_vm0, %v27_v14 }
  0x37   :  { %271 = vmatpush3.xpose.msk.msra.mxu0 %vm41_vm0, %v27_v14 }
  0x38   :  { %272 = vmatprep.subr.msk.mxu0 %vm41_vm0, %v26_v15 }
  0x3b   :  { %273 = vmatpush3.xpose.msk.msra.mxu0 %vm41_vm0, %v26_v15 }
  0x3c   :  { %274 = vmatprep.subr.msk.mxu0 %vm41_vm0, %v25_v16 }
  0x3f   :  { %275 = vmatpush3.xpose.msk.msra.mxu0 %vm41_vm0, %v25_v16 }
  0x42   :  { %277 = vmatmul.mubr.msk.f32.vlgmr.msra.gmra.mxu0 %vm41_vm0, %v24_v17 }
 0x102   :  { %v278_v19 = vpop.f32.mrf.mxu0 }
 0x103   :  { %v188_v20 = vadd.f32 %v278_v19, %v225_v18 }
 0x104   :  { %v162_v21 = vpop.f32.mrf.mxu0 }
 0x105   :  { %190 = vst [vmem:[#allocation3 + $0x8] sm:$0xff] %v188_v20  ;;  %v187_v22 = vadd.f32 %v225_v18, %v162_v21 }
 0x107   :  { %189 = vst [vmem:[#allocation3] sm:$0xff] %v187_v22 }
 0x108   :  { %293 = shalt.err (!%p290_p4)
}
 0x109   :  { %s305_s0 = smov 128   ;;  %s306_s25 = smov 8  }
 0x10a   :  { %202 = dma.vmem_to_hbm [thread:$0]  %s197_s24, 256, %s424_s3, [#allocation4], %s305_s0, %s305_s0, %s306_s25  }
 0x10b   :  { %302 = dma.done.wait [#allocation4], 256  }
 0x10c   :  { %303 = vsyncadd [#allocation4], 4294967040 }
 0x10d   :  { %206 = vsyncpa [#allocation4], 1 }

</bundles_post_ra>
